<compile_context>
chip_gen: v6e
topology: v6e:2x2x1
jax: 0.10.0
libtpu: 0.0.40
codegen_flags: <defaults>
</compile_context>

<pallas_src>
import functools

import jax
import jax.numpy as jnp
from jax.experimental import pallas as pl
from jax.experimental.pallas import tpu as pltpu


def _linear_kernel(x_ref, w_ref, b_ref, o_ref, *, pack, d):
    """One row tile of the packed matvec.

    x_ref: (TMp, PACK*D) VMEM   -- each row holds PACK consecutive examples.
    w_ref: (1,   PACK*D) VMEM   -- W tiled PACK times (resident across steps).
    b_ref: (1,)          SMEM   -- scalar bias.
    o_ref: (TMp, PACK)   VMEM   -- o[p, g] = y[p*PACK + g].
    """
    xw = x_ref[...] * w_ref[...]                    # VPU, all 128 lanes used
    if pack == 1:
        # Generic fallback (D does not divide 128): plain lane reduction.
        z = jnp.sum(xw, axis=1, keepdims=True)
    else:
        lanes = pack * d
        # Segmented lane reduction via log2(D) cyclic roll+add steps (XLU).
        # Afterwards lane g*D holds sum_d xw[:, g*D + d]; those lanes never
        # wrap because g*D + D - 1 <= lanes - 1.
        s = xw
        step = d // 2
        while step >= 1:
            s = s + pltpu.roll(s, shift=lanes - step, axis=1)
            step //= 2
        z = jnp.concatenate(
            [s[:, g * d:g * d + 1] for g in range(pack)], axis=1)  # (TMp, PACK)
    o_ref[...] = (z + b_ref[0]).astype(o_ref.dtype)  # scalar bias from SMEM


def _vmem_budget_bytes():
    """Per-generation scoped-VMEM budget: ~half of physical, capped at 64 MiB."""
    try:
        phys = int(pltpu.get_tpu_info().vmem_capacity_bytes)
    except Exception:
        return 32 * 1024 * 1024                      # safe on v5e / v6e / v7x
    return int(min(max(phys // 2, 16 * 1024 * 1024), 64 * 1024 * 1024))


def linear_regression_forward(x, w, b, *, block_rows=None):
    """Forward pass of LinearRegression: x @ w.T + b  -> (N, 1)."""
    N, D = x.shape
    assert w.shape == (1, D) and b.shape == (1,)

    # Pack PACK = 128 // D consecutive examples per 128-lane row (free reshape).
    pack = 128 // D if (D <= 128 and 128 % D == 0) else 1
    lanes = pack * D

    n_pad = pl.cdiv(N, pack) * pack
    if n_pad != N:
        # Only when N % PACK != 0: pad < PACK rows so the packing reshape is
        # valid (this is the one remaining wrapper-side copy of X).
        x = jnp.pad(x, ((0, n_pad - N), (0, 0)))
    rows = n_pad // pack                              # packed rows
    xp = x.reshape(rows, lanes)                       # free row-major view
    wp = jnp.tile(w.astype(x.dtype), (1, pack))       # (1, PACK*D), tiny

    vmem_budget = _vmem_budget_bytes()
    if block_rows is None:
        # Double-buffered VMEM per example: packed X share (D*4 B) plus the
        # lane-padded output share (128*4/PACK B), two buffers each.
        per_example = 2 * (D * 4) + 2 * (128 * 4 // pack)
        block_rows = max(8 * pack, (vmem_budget // 2) // per_example)
    tile_rows = max(8, (block_rows // pack) // 8 * 8)  # packed rows per step
    tile_rows = min(tile_rows, rows)                   # small N: one grid step
    grid = (pl.cdiv(rows, tile_rows),)                 # ragged last block OK

    kernel = functools.partial(_linear_kernel, pack=pack, d=D)
    out = pl.pallas_call(
        kernel,
        out_shape=jax.ShapeDtypeStruct((rows, pack), x.dtype),
        grid=grid,
        in_specs=[
            # X: one (tile_rows, PACK*D) packed tile per step -> pipelined DMA.
            pl.BlockSpec((tile_rows, lanes), lambda i: (i, 0)),
            # W: constant index map -> stays resident in VMEM across steps.
            pl.BlockSpec((1, lanes), lambda i: (0, 0)),
            # b: scalar parameter in SMEM.
            pl.BlockSpec(memory_space=pltpu.MemorySpace.SMEM),
        ],
        out_specs=pl.BlockSpec((tile_rows, pack), lambda i: (i, 0)),
        compiler_params=pltpu.CompilerParams(
            dimension_semantics=("parallel",),
            vmem_limit_bytes=vmem_budget,
        ),
    )(xp, wp, b)
    # (rows, PACK) row-major is exactly y[0 .. n_pad): free reshape, then slice.
    return out.reshape(n_pad, 1)[:N]


if __name__ == "__main__":
    key = jax.random.PRNGKey(0)
    kx, kw, kx2, kx3 = jax.random.split(key, 4)

    # Parameter init matching the module: weight ~ Normal(0, 0.01), bias = 0.
    D = 32
    w = 0.01 * jax.random.normal(kw, (1, D), dtype=jnp.float32)
    b = jnp.zeros((1,), dtype=jnp.float32)

    # (1) Tiny batch: whole array in a single grid step.
    N = 8
    x = jax.random.normal(kx, (N, D), dtype=jnp.float32)
    y = linear_regression_forward(x, w, b)
    jax.block_until_ready(y)
    y_ref = jnp.sum(x * w, axis=1, keepdims=True) + b   # exact f32 reference
    assert y.shape == (N, 1)
    assert jnp.allclose(y, y_ref, atol=1e-5, rtol=1e-5)

    # (2) N not a multiple of the packing factor (exercises the tail pad path).
    N2 = 1037
    x2 = jax.random.normal(kx2, (N2, D), dtype=jnp.float32)
    y2 = linear_regression_forward(x2, w, b)
    jax.block_until_ready(y2)
    y2_ref = jnp.sum(x2 * w, axis=1, keepdims=True) + b
    assert y2.shape == (N2, 1)
    assert jnp.allclose(y2, y2_ref, atol=1e-5, rtol=1e-5)

    # (3) Multi-tile grid with a ragged (unpadded) last block.
    N3 = 5000
    x3 = jax.random.normal(kx3, (N3, D), dtype=jnp.float32)
    y3 = linear_regression_forward(x3, w, b, block_rows=2048)
    jax.block_until_ready(y3)
    y3_ref = jnp.sum(x3 * w, axis=1, keepdims=True) + b
    assert y3.shape == (N3, 1)
    assert jnp.allclose(y3, y3_ref, atol=1e-5, rtol=1e-5)

    print("KERNEL_OK")
</pallas_src>

<mosaic_0001>
module attributes {stable_mosaic.version = 11 : i64} {
  func.func @_linear_kernel(%arg0: i32, %arg1: memref<2x128xf32, #tpu.memory_space<vmem>>, %arg2: memref<1x128xf32, #tpu.memory_space<vmem>>, %arg3: memref<1xf32, #tpu.memory_space<smem>>, %arg4: memref<2x4xf32, #tpu.memory_space<vmem>>) attributes {dimension_semantics = [#tpu.dimension_semantics<parallel>], iteration_bounds = array<i64: 1>, scalar_prefetch = 0 : i64, scratch_operands = 0 : i64, tpu.core_type = #tpu.core_type<tc>, window_params = [{transform_indices = @transform_0, window_bounds = array<i64: 2, 128>}, {pipeline_mode = #tpu.pipeline_mode<synchronous>, transform_indices = @transform_1, window_bounds = array<i64: 1, 128>}, {transform_indices = @transform_2, window_bounds = array<i64: 1>}, {transform_indices = @transform_3, window_bounds = array<i64: 2, 4>}]} {
    %c0 = arith.constant 0 : index
    %c0_0 = arith.constant 0 : index
    %0 = vector.load %arg1[%c0, %c0_0] : memref<2x128xf32, #tpu.memory_space<vmem>>, vector<2x128xf32>
    %c0_1 = arith.constant 0 : index
    %c0_2 = arith.constant 0 : index
    %1 = vector.load %arg2[%c0_1, %c0_2] : memref<1x128xf32, #tpu.memory_space<vmem>>, vector<1x128xf32>
    %2 = vector.broadcast %1 : vector<1x128xf32> to vector<2x128xf32>
    %3 = arith.mulf %0, %2 : vector<2x128xf32>
    %c112_i32 = arith.constant 112 : i32
    %4 = tpu.dynamic_rotate %3 by %c112_i32 dim 1 : vector<2x128xf32>, i32 -> vector<2x128xf32>
    %5 = arith.addf %3, %4 : vector<2x128xf32>
    %c120_i32 = arith.constant 120 : i32
    %6 = tpu.dynamic_rotate %5 by %c120_i32 dim 1 : vector<2x128xf32>, i32 -> vector<2x128xf32>
    %7 = arith.addf %5, %6 : vector<2x128xf32>
    %c124_i32 = arith.constant 124 : i32
    %8 = tpu.dynamic_rotate %7 by %c124_i32 dim 1 : vector<2x128xf32>, i32 -> vector<2x128xf32>
    %9 = arith.addf %7, %8 : vector<2x128xf32>
    %c126_i32 = arith.constant 126 : i32
    %10 = tpu.dynamic_rotate %9 by %c126_i32 dim 1 : vector<2x128xf32>, i32 -> vector<2x128xf32>
    %11 = arith.addf %9, %10 : vector<2x128xf32>
    %c127_i32 = arith.constant 127 : i32
    %12 = tpu.dynamic_rotate %11 by %c127_i32 dim 1 : vector<2x128xf32>, i32 -> vector<2x128xf32>
    %13 = arith.addf %11, %12 : vector<2x128xf32>
    %14 = vector.extract_strided_slice %13 {offsets = [0, 0], sizes = [2, 1], strides = [1, 1]} : vector<2x128xf32> to vector<2x1xf32>
    %15 = vector.extract_strided_slice %13 {offsets = [0, 32], sizes = [2, 1], strides = [1, 1]} : vector<2x128xf32> to vector<2x1xf32>
    %16 = vector.extract_strided_slice %13 {offsets = [0, 64], sizes = [2, 1], strides = [1, 1]} : vector<2x128xf32> to vector<2x1xf32>
    %17 = vector.extract_strided_slice %13 {offsets = [0, 96], sizes = [2, 1], strides = [1, 1]} : vector<2x128xf32> to vector<2x1xf32>
    %18 = tpu.concatenate %14, %15, %16, %17 in 1 : vector<2x1xf32>, vector<2x1xf32>, vector<2x1xf32>, vector<2x1xf32> -> vector<2x4xf32>
    %c0_3 = arith.constant 0 : index
    %19 = memref.load %arg3[%c0_3] : memref<1xf32, #tpu.memory_space<smem>>
    %20 = vector.broadcast %19 : f32 to vector<2x4xf32>
    %21 = arith.addf %18, %20 : vector<2x4xf32>
    %c0_4 = arith.constant 0 : index
    %c0_5 = arith.constant 0 : index
    %22 = vector.load %arg4[%c0_4, %c0_5] : memref<2x4xf32, #tpu.memory_space<vmem>>, vector<2x4xf32>
    tpu.vector_store %arg4[%c0_4, %c0_5], %21 {strides = array<i32>} : memref<2x4xf32, #tpu.memory_space<vmem>>, vector<2x4xf32>,
    return
  }
  func.func @transform_0(%arg0: i32) -> (i32, i32) {
    %c0_i32 = arith.constant 0 : i32
    %c0_i32_0 = arith.constant 0 : i32
    return %arg0, %c0_i32 : i32, i32
  }
  func.func @transform_1(%arg0: i32) -> (i32, i32) {
    %c0_i32 = arith.constant 0 : i32
    %c0_i32_0 = arith.constant 0 : i32
    %c0_i32_1 = arith.constant 0 : i32
    return %c0_i32, %c0_i32_0 : i32, i32
  }
  func.func @transform_2(%arg0: i32) -> i32 {
    %c0_i32 = arith.constant 0 : i32
    %c0_i32_0 = arith.constant 0 : i32
    return %c0_i32 : i32
  }
  func.func @transform_3(%arg0: i32) -> (i32, i32) {
    %c0_i32 = arith.constant 0 : i32
    %c0_i32_0 = arith.constant 0 : i32
    return %arg0, %c0_i32 : i32, i32
  }
}

</mosaic_0001>

<bundles_post_ra>
// kernel: tpu_custom_call.1
= control target key start
LH: loop header
LB: loop body
LE: loop exit
PB: predicated region body
PF: predicated region fallthrough
CT: control target
= control target key end

     0   :  { %s148_s0 = inlined_call_operand.vmem [shape: f32[2,128], index: 0, kind: input, shape index: {}]   ;;  %s149_s1 = inlined_call_operand.vmem [shape: f32[1,128], index: 1, kind: input, shape index: {}]   ;;  %s150_s2 = inlined_call_operand.<no memory space> [shape: f32[1], index: 2, kind: input, shape index: {}]   ;;  %s151_s3 = inlined_call_operand.hbm [shape: f32[2,4], index: 3, kind: output, shape index: {}]  }
   0x1   :  { %v16_v0 = vld [vmem:[%s148_s0] sm:$0x3] }
   0x2   :  { %v75_v1 = vld [vmem:[%s149_s1] ss:$0 sm:$0xff] }
   0x3   :  { %v24_v2 = vmul.f32 %v75_v1, %v16_v0 }
   0x4   :  { %9 = vsyncpa [#allocation4], 0  ;;  %s107_s16 = smov 112   ;;  %s108_s17 = smov 120   ;;  %vm50_vm0 = vcmask 7168   ;;  %vm52_vm1 = vcmask 15360   ;;  %v57_v16 = vstv %s150_s2 }
   0x5   :  { %25 = vrot.lane.b32.xlu0 %v24_v2, %s107_s16  ;;  %s109_s18 = smov 124   ;;  %s110_s19 = smov 126   ;;  %vm54_vm2 = vcmask 23552   ;;  %vm59_vm3 = vcmask 25600  }
   0x6   :  { %s111_s0 = smov 127   ;;  %s112_s1 = smov 66  }
   0x7   :  { %s113_s20 = smov 97   ;;  %s114_s21 = smov 35  }
   0x8   :  { %s115_s24 = smov [#allocation3]  }
   0x9   :  { %s67_s25 = sshll.u32 %s115_s24, 4  ;;  %s68_s25 = int_to_ptr.vmem [resolvable:$true] %s67_s25 }
   0xa   :  { %s85_s26 = scalar_lea.vmem %s68_s25, 32  ;;  %p90_p1 = scmp.lt.s32.totalorder %s68_s25, %s68_s25 }
   0xb   :  { %p86_p0 = scmp.ne.s32.totalorder %s68_s25, %s85_s26  ;;  %p91_p2 = scmp.lt.s32.totalorder %s85_s26, %s85_s26 }
   0xd   :  { %p92_p3 = por %p91_p2, %p90_p1 }
   0xf   :  { %p93_p4 = pnand %p92_p3, %p86_p0 }
  0x77   :  { %v26_v3 = vpop.permute.xlu0 %25 }
  0x78   :  { %v27_v4 = vadd.f32 %v26_v3, %v24_v2 }
  0x7a   :  { %28 = vrot.lane.b32.xlu0 %v27_v4, %s108_s17 }
  0xec   :  { %v29_v5 = vpop.permute.xlu0 %28 }
  0xed   :  { %v30_v6 = vadd.f32 %v29_v5, %v27_v4 }
  0xef   :  { %31 = vrot.lane.b32.xlu1 %v30_v6, %s109_s18 }
 0x161   :  { %v32_v7 = vpop.permute.xlu1 %31 }
 0x162   :  { %v33_v8 = vadd.f32 %v32_v7, %v30_v6 }
 0x164   :  { %34 = vrot.lane.b32.xlu1 %v33_v8, %s110_s19 }
 0x1d6   :  { %v35_v9 = vpop.permute.xlu1 %34 }
 0x1d7   :  { %v36_v10 = vadd.f32 %v35_v9, %v33_v8 }
 0x1d9   :  { %37 = vrot.lane.b32.xlu0 %v36_v10, %s111_s0 }
 0x24b   :  { %v38_v11 = vpop.permute.xlu0 %37 }
 0x24c   :  { %v39_v12 = vadd.f32 %v38_v11, %v36_v10 }
 0x24e   :  { %44 = vrot.lane.b32.xlu0 %v39_v12, %s112_s1  ;;  %41 = vrot.lane.b32.xlu1 %v39_v12, %s113_s20 }
 0x252   :  { %47 = vrot.lane.b32.xlu1 %v39_v12, %s114_s21 }
 0x2c0   :  { %v42_v13 = vpop.permute.xlu1 %41  ;;  %v45_v14 = vpop.permute.xlu0 %44 }
 0x2c1   :  { %v51_v15 = vsel %vm50_vm0, %v39_v12, %v42_v13 }
 0x2c2   :  { %v53_v17 = vsel %vm52_vm1, %v51_v15, %v45_v14 }
 0x2c4   :  { %v48_v18 = vpop.permute.xlu1 %47 }
 0x2c5   :  { %v55_v19 = vsel %vm54_vm2, %v53_v17, %v48_v18 }
 0x2c6   :  { %v58_v20 = vadd.f32 %v57_v16, %v55_v19 }
 0x2c8   :  { %60 = vst.msk [vmem:[#allocation3] sm:$0x3] %vm59_vm3, %v58_v20 }
 0x2c9   :  { %96 = shalt.err (!%p93_p4)
}
 0x2ca   :  { %70 = dma.vmem_to_hbm [thread:$0]  %s68_s25, 32, %s151_s3, [#allocation4]  }
 0x2cb   :  { %105 = dma.done.wait [#allocation4], 32  }
 0x2cc   :  { %106 = vsyncadd [#allocation4], 4294967264 }
 0x2cd   :  { %74 = vsyncpa [#allocation4], 1 }

</bundles_post_ra>
